<compile_context>
chip_gen: v7x
topology: tpu7x:2x2x1
jax: 0.10.0
libtpu: 0.0.40
codegen_flags: <defaults>
</compile_context>

<pallas_src>
import functools

import jax
import jax.numpy as jnp
from jax.experimental import pallas as pl
from jax.experimental.pallas import tpu as pltpu


def _round_up(x, m):
    return ((x + m - 1) // m) * m


def _lc_kernel(x_ref, w_ref, b_ref, o_ref, *, rc):
    """One (d-tile, n-tile) block.

    x_ref: (m_in, tn, td)   w_ref: (m_in, m_out, td)   b_ref: (m_out, td)
    o_ref: (m_out, tn, td)

    td = node (d) tile on the lane axis, tn = batch tile on the sublane axis.
    Rows are processed in chunks of `rc` so the m_out dense (rc, td) f32
    accumulators plus one x slice stay in vector registers -> one fused pass
    over the block (stores ~= output vregs).
    """
    m_in, tn, td = x_ref.shape
    m_out = o_ref.shape[0]

    # Hoist the tiny (1, td) weight / bias rows out of the row-chunk loop so
    # the slice/extract work happens once per kernel invocation.
    wrow = [[w_ref[i, o:o + 1, :].astype(jnp.float32) for o in range(m_out)]
            for i in range(m_in)]
    brow = [b_ref[o:o + 1, :].astype(jnp.float32) for o in range(m_out)]

    for r0 in range(0, tn, rc):
        rows = min(rc, tn - r0)
        accs = None
        for i in range(m_in):
            xi = x_ref[i, r0:r0 + rows, :].astype(jnp.float32)   # (rows, td)
            if accs is None:
                accs = [xi * wrow[i][o] + brow[o] for o in range(m_out)]
            else:
                accs = [accs[o] + xi * wrow[i][o] for o in range(m_out)]
        if accs is None:  # degenerate m_in == 0: output is just the bias
            accs = [jnp.broadcast_to(brow[o], (rows, td)) for o in range(m_out)]
        for o in range(m_out):
            o_ref[o, r0:r0 + rows, :] = accs[o].astype(o_ref.dtype)


def _choose_tiles(n, d, m_in, m_out, itemsize):
    """Pick (tn, td, rc): batch (sublane) tile, node (lane) tile, row chunk."""
    sub = {4: 8, 2: 16, 1: 32}.get(itemsize, 8)   # min sublane tile for dtype

    # Lane tile over d: full extent when it fits (always legal), else a
    # multiple of 128.
    td = d if d <= 1024 else 1024
    td_pad = _round_up(td, 128)

    # In-kernel row chunk: keep (m_out accumulators + one x slice) within
    # ~40 f32 vregs (~160 KiB) so the MAC chain stays in registers.
    rc = (160 * 1024) // ((m_out + 1) * td_pad * 4)
    rc = min(256, max(sub, (rc // sub) * sub))

    # Batch tile: target ~6 MiB of streamed (x + out) bytes per buffer copy
    # (the pipeline double-buffers), far above the ~0.35 us/step overhead
    # amortization point.
    target = 6 * 1024 * 1024
    tn = target // max(1, (m_in + m_out) * td_pad * itemsize)
    tn = max(rc, (tn // rc) * rc)
    if tn >= n:
        tn = n                      # full extent is always a legal block dim
        rc = min(rc, tn)

    # Padding- and double-buffering-aware VMEM footprint; shrink if needed so
    # it stays well under the 32 MiB scoped limit set below (safe for v7x's
    # 64 MiB physical VMEM and v5e's 16 MiB default scoped limit).
    def footprint(tn_):
        tn_pad = _round_up(max(tn_, 1), sub)
        mo_pad = _round_up(m_out, sub)
        x_blk = m_in * tn_pad * td_pad * itemsize
        o_blk = m_out * tn_pad * td_pad * itemsize
        w_blk = m_in * mo_pad * td_pad * itemsize
        b_blk = mo_pad * td_pad * itemsize
        return 2 * (x_blk + o_blk + w_blk + b_blk)   # x2: double buffering

    while tn > rc and footprint(tn) > 20 * 1024 * 1024:
        tn = max(rc, ((tn // 2) // rc) * rc)
    return tn, td, rc


def locally_connected_lane_major(x_ld, weight_ld, bias_ld):
    """Kernel-native (lane-major) entry point — no HBM transposes.

    x_ld:      [m_in, n, d]
    weight_ld: [m_in, m_out, d]
    bias_ld:   [m_out, d]
    returns:   [m_out, n, d]
    """
    m_in, n, d = x_ld.shape
    m_in_w, m_out, d_w = weight_ld.shape
    assert (m_in, d) == (m_in_w, d_w)
    assert bias_ld.shape == (m_out, d)

    itemsize = jnp.dtype(x_ld.dtype).itemsize
    tn, td, rc = _choose_tiles(n, d, m_in, m_out, itemsize)
    d_tiles = pl.cdiv(d, td)
    n_tiles = pl.cdiv(n, tn)

    # d outer (weight / bias blocks stay VMEM-resident across the inner n
    # loop) unless d fits one tile, in which case put n outer so a v7x
    # megacore has >= 2 blocks on the outer parallel axis to split across its
    # two TensorCores (weight residency is then free anyway: d block index is
    # constant).
    n_outer = (d_tiles == 1 and n_tiles > 1)
    if n_outer:
        grid = (n_tiles, d_tiles)
        jd = lambda a, b: b
        jn = lambda a, b: a
    else:
        grid = (d_tiles, n_tiles)
        jd = lambda a, b: a
        jn = lambda a, b: b

    x_spec = pl.BlockSpec((m_in, tn, td), lambda a, b: (0, jn(a, b), jd(a, b)))
    w_spec = pl.BlockSpec((m_in, m_out, td), lambda a, b: (0, 0, jd(a, b)))
    b_spec = pl.BlockSpec((m_out, td), lambda a, b: (0, jd(a, b)))
    o_spec = pl.BlockSpec((m_out, tn, td), lambda a, b: (0, jn(a, b), jd(a, b)))

    bytes_accessed = ((x_ld.size + weight_ld.size + bias_ld.size) * itemsize
                      + m_out * n * d * itemsize)
    cost = pl.CostEstimate(flops=2 * n * d * m_in * m_out,
                           transcendentals=0,
                           bytes_accessed=bytes_accessed)

    return pl.pallas_call(
        functools.partial(_lc_kernel, rc=rc),
        out_shape=jax.ShapeDtypeStruct((m_out, n, d), x_ld.dtype),
        grid=grid,
        in_specs=[x_spec, w_spec, b_spec],
        out_specs=o_spec,
        compiler_params=pltpu.CompilerParams(
            dimension_semantics=("parallel", "parallel"),
            vmem_limit_bytes=32 * 1024 * 1024),
        cost_estimate=cost,
    )(x_ld, weight_ld, bias_ld)


def locally_connected(x, weight, bias=None):
    """PyTorch-layout wrapper (drop-in for LocallyConnected.forward).

    x: [n, d, m_in], weight: [d, m_in, m_out], bias: [d, m_out] -> [n, d, m_out]

    NOTE: the layout conversion costs one extra HBM round trip on x and out.
    Hot paths should pre-transpose the (tiny) params once at init and use
    `locally_connected_lane_major` end-to-end so the big arrays never make
    the extra trip.
    """
    n, d, m_in = x.shape
    d_w, m_in_w, m_out = weight.shape
    assert (d, m_in) == (d_w, m_in_w)

    x_ld = jnp.transpose(x, (2, 0, 1))             # [m_in, n, d]
    w_ld = jnp.transpose(weight, (1, 2, 0))        # [m_in, m_out, d]
    if bias is None:
        b_ld = jnp.zeros((m_out, d), dtype=x.dtype)
    else:
        assert bias.shape == (d, m_out)
        b_ld = jnp.transpose(bias, (1, 0))         # [m_out, d]

    out_ld = locally_connected_lane_major(x_ld, w_ld, b_ld)   # [m_out, n, d]
    return jnp.transpose(out_ld, (1, 2, 0))        # [n, d, m_out]


def init_params(key, d, m_in, m_out, dtype=jnp.float32):
    """Matches nn.Module.reset_parameters: U(-sqrt(1/m_in), sqrt(1/m_in))."""
    bound = (1.0 / m_in) ** 0.5
    kw, kb = jax.random.split(key)
    weight = jax.random.uniform(kw, (d, m_in, m_out), dtype=dtype,
                                minval=-bound, maxval=bound)
    bias = jax.random.uniform(kb, (d, m_out), dtype=dtype,
                              minval=-bound, maxval=bound)
    return weight, bias


if __name__ == "__main__":
    key = jax.random.PRNGKey(0)

    # 1) Small case, PyTorch layout (matches the module's forward exactly).
    n, d, m_in, m_out = 8, 5, 16, 4
    kx, kp, krest = jax.random.split(key, 3)
    x = jax.random.normal(kx, (n, d, m_in), dtype=jnp.float32)
    weight, bias = init_params(kp, d, m_in, m_out)
    out = jax.block_until_ready(locally_connected(x, weight, bias))
    ref = jnp.einsum("ndi,dio->ndo", x, weight,
                     precision=jax.lax.Precision.HIGHEST) + bias[None, :, :]
    assert out.shape == (n, d, m_out)
    assert jnp.allclose(out, ref, atol=1e-5, rtol=1e-5)

    # 2) NOTEARS-sized case, kernel-native layout, f32: single d tile ->
    #    n goes on the outer (megacore) grid axis; ragged n edge block.
    n2, d2, mi2, mo2 = 200, 1000, 10, 2
    ka, kb, kc, krest = jax.random.split(krest, 4)
    x_ld = jax.random.normal(ka, (mi2, n2, d2), dtype=jnp.float32)
    w_ld = jax.random.normal(kb, (mi2, mo2, d2), dtype=jnp.float32) * 0.3
    b_ld = jax.random.normal(kc, (mo2, d2), dtype=jnp.float32) * 0.1
    out2 = jax.block_until_ready(locally_connected_lane_major(x_ld, w_ld, b_ld))
    ref2 = jnp.einsum("ind,iod->ond", x_ld, w_ld,
                      precision=jax.lax.Precision.HIGHEST) + b_ld[:, None, :]
    assert out2.shape == (mo2, n2, d2)
    assert jnp.allclose(out2, ref2, atol=1e-4, rtol=1e-4)

    # 3) bf16 I/O path (halves HBM bytes; f32 accumulation in-kernel).
    n3, d3, mi3, mo3 = 64, 300, 10, 2
    ka, kb, kc, krest = jax.random.split(krest, 4)
    x3 = jax.random.normal(ka, (mi3, n3, d3), jnp.float32).astype(jnp.bfloat16)
    w3 = (jax.random.normal(kb, (mi3, mo3, d3), jnp.float32) * 0.3
          ).astype(jnp.bfloat16)
    b3 = (jax.random.normal(kc, (mo3, d3), jnp.float32) * 0.1
          ).astype(jnp.bfloat16)
    out3 = jax.block_until_ready(locally_connected_lane_major(x3, w3, b3))
    ref3 = (jnp.einsum("ind,iod->ond", x3.astype(jnp.float32),
                       w3.astype(jnp.float32),
                       precision=jax.lax.Precision.HIGHEST)
            + b3.astype(jnp.float32)[:, None, :])
    assert out3.dtype == jnp.bfloat16
    assert jnp.allclose(out3.astype(jnp.float32), ref3, atol=5e-2, rtol=5e-2)

    # 4) Multi-d-tile case (d > lane tile): d-outer grid keeps weight/bias
    #    VMEM-resident across the inner n loop; ragged lane edge on tile 1.
    n4, d4, mi4, mo4 = 32, 1300, 6, 3
    ka, kb, kc, _ = jax.random.split(krest, 4)
    x4 = jax.random.normal(ka, (mi4, n4, d4), dtype=jnp.float32)
    w4 = jax.random.normal(kb, (mi4, mo4, d4), dtype=jnp.float32) * 0.3
    b4 = jax.random.normal(kc, (mo4, d4), dtype=jnp.float32) * 0.1
    out4 = jax.block_until_ready(locally_connected_lane_major(x4, w4, b4))
    ref4 = jnp.einsum("ind,iod->ond", x4, w4,
                      precision=jax.lax.Precision.HIGHEST) + b4[:, None, :]
    assert jnp.allclose(out4, ref4, atol=1e-4, rtol=1e-4)

    print("KERNEL_OK")
</pallas_src>

<mosaic_0001>
module attributes {stable_mosaic.version = 11 : i64} {
  func.func @_lc_kernel(%arg0: i32, %arg1: i32, %arg2: memref<16x8x5xf32, #tpu.memory_space<vmem>>, %arg3: memref<16x4x5xf32, #tpu.memory_space<vmem>>, %arg4: memref<4x5xf32, #tpu.memory_space<vmem>>, %arg5: memref<4x8x5xf32, #tpu.memory_space<vmem>>) attributes {dimension_semantics = [#tpu.dimension_semantics<parallel>, #tpu.dimension_semantics<parallel>], iteration_bounds = array<i64: 1, 1>, scalar_prefetch = 0 : i64, scratch_operands = 0 : i64, tpu.core_type = #tpu.core_type<tc>, window_params = [{transform_indices = @transform_0, window_bounds = array<i64: 16, 8, 5>}, {transform_indices = @transform_1, window_bounds = array<i64: 16, 4, 5>}, {transform_indices = @transform_2, window_bounds = array<i64: 4, 5>}, {transform_indices = @transform_3, window_bounds = array<i64: 4, 8, 5>}]} {
    %c0 = arith.constant 0 : index
    %c0_0 = arith.constant 0 : index
    %c0_1 = arith.constant 0 : index
    %0 = vector.load %arg3[%c0, %c0_0, %c0_1] : memref<16x4x5xf32, #tpu.memory_space<vmem>>, vector<1x1x5xf32>
    %1 = vector.shape_cast %0 : vector<1x1x5xf32> to vector<1x5xf32>
    %c0_2 = arith.constant 0 : index
    %c1 = arith.constant 1 : index
    %c0_3 = arith.constant 0 : index
    %2 = vector.load %arg3[%c0_2, %c1, %c0_3] : memref<16x4x5xf32, #tpu.memory_space<vmem>>, vector<1x1x5xf32>
    %3 = vector.shape_cast %2 : vector<1x1x5xf32> to vector<1x5xf32>
    %c0_4 = arith.constant 0 : index
    %c2 = arith.constant 2 : index
    %c0_5 = arith.constant 0 : index
    %4 = vector.load %arg3[%c0_4, %c2, %c0_5] : memref<16x4x5xf32, #tpu.memory_space<vmem>>, vector<1x1x5xf32>
    %5 = vector.shape_cast %4 : vector<1x1x5xf32> to vector<1x5xf32>
    %c0_6 = arith.constant 0 : index
    %c3 = arith.constant 3 : index
    %c0_7 = arith.constant 0 : index
    %6 = vector.load %arg3[%c0_6, %c3, %c0_7] : memref<16x4x5xf32, #tpu.memory_space<vmem>>, vector<1x1x5xf32>
    %7 = vector.shape_cast %6 : vector<1x1x5xf32> to vector<1x5xf32>
    %c1_8 = arith.constant 1 : index
    %c0_9 = arith.constant 0 : index
    %c0_10 = arith.constant 0 : index
    %8 = vector.load %arg3[%c1_8, %c0_9, %c0_10] : memref<16x4x5xf32, #tpu.memory_space<vmem>>, vector<1x1x5xf32>
    %9 = vector.shape_cast %8 : vector<1x1x5xf32> to vector<1x5xf32>
    %c1_11 = arith.constant 1 : index
    %c1_12 = arith.constant 1 : index
    %c0_13 = arith.constant 0 : index
    %10 = vector.load %arg3[%c1_11, %c1_12, %c0_13] : memref<16x4x5xf32, #tpu.memory_space<vmem>>, vector<1x1x5xf32>
    %11 = vector.shape_cast %10 : vector<1x1x5xf32> to vector<1x5xf32>
    %c1_14 = arith.constant 1 : index
    %c2_15 = arith.constant 2 : index
    %c0_16 = arith.constant 0 : index
    %12 = vector.load %arg3[%c1_14, %c2_15, %c0_16] : memref<16x4x5xf32, #tpu.memory_space<vmem>>, vector<1x1x5xf32>
    %13 = vector.shape_cast %12 : vector<1x1x5xf32> to vector<1x5xf32>
    %c1_17 = arith.constant 1 : index
    %c3_18 = arith.constant 3 : index
    %c0_19 = arith.constant 0 : index
    %14 = vector.load %arg3[%c1_17, %c3_18, %c0_19] : memref<16x4x5xf32, #tpu.memory_space<vmem>>, vector<1x1x5xf32>
    %15 = vector.shape_cast %14 : vector<1x1x5xf32> to vector<1x5xf32>
    %c2_20 = arith.constant 2 : index
    %c0_21 = arith.constant 0 : index
    %c0_22 = arith.constant 0 : index
    %16 = vector.load %arg3[%c2_20, %c0_21, %c0_22] : memref<16x4x5xf32, #tpu.memory_space<vmem>>, vector<1x1x5xf32>
    %17 = vector.shape_cast %16 : vector<1x1x5xf32> to vector<1x5xf32>
    %c2_23 = arith.constant 2 : index
    %c1_24 = arith.constant 1 : index
    %c0_25 = arith.constant 0 : index
    %18 = vector.load %arg3[%c2_23, %c1_24, %c0_25] : memref<16x4x5xf32, #tpu.memory_space<vmem>>, vector<1x1x5xf32>
    %19 = vector.shape_cast %18 : vector<1x1x5xf32> to vector<1x5xf32>
    %c2_26 = arith.constant 2 : index
    %c2_27 = arith.constant 2 : index
    %c0_28 = arith.constant 0 : index
    %20 = vector.load %arg3[%c2_26, %c2_27, %c0_28] : memref<16x4x5xf32, #tpu.memory_space<vmem>>, vector<1x1x5xf32>
    %21 = vector.shape_cast %20 : vector<1x1x5xf32> to vector<1x5xf32>
    %c2_29 = arith.constant 2 : index
    %c3_30 = arith.constant 3 : index
    %c0_31 = arith.constant 0 : index
    %22 = vector.load %arg3[%c2_29, %c3_30, %c0_31] : memref<16x4x5xf32, #tpu.memory_space<vmem>>, vector<1x1x5xf32>
    %23 = vector.shape_cast %22 : vector<1x1x5xf32> to vector<1x5xf32>
    %c3_32 = arith.constant 3 : index
    %c0_33 = arith.constant 0 : index
    %c0_34 = arith.constant 0 : index
    %24 = vector.load %arg3[%c3_32, %c0_33, %c0_34] : memref<16x4x5xf32, #tpu.memory_space<vmem>>, vector<1x1x5xf32>
    %25 = vector.shape_cast %24 : vector<1x1x5xf32> to vector<1x5xf32>
    %c3_35 = arith.constant 3 : index
    %c1_36 = arith.constant 1 : index
    %c0_37 = arith.constant 0 : index
    %26 = vector.load %arg3[%c3_35, %c1_36, %c0_37] : memref<16x4x5xf32, #tpu.memory_space<vmem>>, vector<1x1x5xf32>
    %27 = vector.shape_cast %26 : vector<1x1x5xf32> to vector<1x5xf32>
    %c3_38 = arith.constant 3 : index
    %c2_39 = arith.constant 2 : index
    %c0_40 = arith.constant 0 : index
    %28 = vector.load %arg3[%c3_38, %c2_39, %c0_40] : memref<16x4x5xf32, #tpu.memory_space<vmem>>, vector<1x1x5xf32>
    %29 = vector.shape_cast %28 : vector<1x1x5xf32> to vector<1x5xf32>
    %c3_41 = arith.constant 3 : index
    %c3_42 = arith.constant 3 : index
    %c0_43 = arith.constant 0 : index
    %30 = vector.load %arg3[%c3_41, %c3_42, %c0_43] : memref<16x4x5xf32, #tpu.memory_space<vmem>>, vector<1x1x5xf32>
    %31 = vector.shape_cast %30 : vector<1x1x5xf32> to vector<1x5xf32>
    %c4 = arith.constant 4 : index
    %c0_44 = arith.constant 0 : index
    %c0_45 = arith.constant 0 : index
    %32 = vector.load %arg3[%c4, %c0_44, %c0_45] : memref<16x4x5xf32, #tpu.memory_space<vmem>>, vector<1x1x5xf32>
    %33 = vector.shape_cast %32 : vector<1x1x5xf32> to vector<1x5xf32>
    %c4_46 = arith.constant 4 : index
    %c1_47 = arith.constant 1 : index
    %c0_48 = arith.constant 0 : index
    %34 = vector.load %arg3[%c4_46, %c1_47, %c0_48] : memref<16x4x5xf32, #tpu.memory_space<vmem>>, vector<1x1x5xf32>
    %35 = vector.shape_cast %34 : vector<1x1x5xf32> to vector<1x5xf32>
    %c4_49 = arith.constant 4 : index
    %c2_50 = arith.constant 2 : index
    %c0_51 = arith.constant 0 : index
    %36 = vector.load %arg3[%c4_49, %c2_50, %c0_51] : memref<16x4x5xf32, #tpu.memory_space<vmem>>, vector<1x1x5xf32>
    %37 = vector.shape_cast %36 : vector<1x1x5xf32> to vector<1x5xf32>
    %c4_52 = arith.constant 4 : index
    %c3_53 = arith.constant 3 : index
    %c0_54 = arith.constant 0 : index
    %38 = vector.load %arg3[%c4_52, %c3_53, %c0_54] : memref<16x4x5xf32, #tpu.memory_space<vmem>>, vector<1x1x5xf32>
    %39 = vector.shape_cast %38 : vector<1x1x5xf32> to vector<1x5xf32>
    %c5 = arith.constant 5 : index
    %c0_55 = arith.constant 0 : index
    %c0_56 = arith.constant 0 : index
    %40 = vector.load %arg3[%c5, %c0_55, %c0_56] : memref<16x4x5xf32, #tpu.memory_space<vmem>>, vector<1x1x5xf32>
    %41 = vector.shape_cast %40 : vector<1x1x5xf32> to vector<1x5xf32>
    %c5_57 = arith.constant 5 : index
    %c1_58 = arith.constant 1 : index
    %c0_59 = arith.constant 0 : index
    %42 = vector.load %arg3[%c5_57, %c1_58, %c0_59] : memref<16x4x5xf32, #tpu.memory_space<vmem>>, vector<1x1x5xf32>
    %43 = vector.shape_cast %42 : vector<1x1x5xf32> to vector<1x5xf32>
    %c5_60 = arith.constant 5 : index
    %c2_61 = arith.constant 2 : index
    %c0_62 = arith.constant 0 : index
    %44 = vector.load %arg3[%c5_60, %c2_61, %c0_62] : memref<16x4x5xf32, #tpu.memory_space<vmem>>, vector<1x1x5xf32>
    %45 = vector.shape_cast %44 : vector<1x1x5xf32> to vector<1x5xf32>
    %c5_63 = arith.constant 5 : index
    %c3_64 = arith.constant 3 : index
    %c0_65 = arith.constant 0 : index
    %46 = vector.load %arg3[%c5_63, %c3_64, %c0_65] : memref<16x4x5xf32, #tpu.memory_space<vmem>>, vector<1x1x5xf32>
    %47 = vector.shape_cast %46 : vector<1x1x5xf32> to vector<1x5xf32>
    %c6 = arith.constant 6 : index
    %c0_66 = arith.constant 0 : index
    %c0_67 = arith.constant 0 : index
    %48 = vector.load %arg3[%c6, %c0_66, %c0_67] : memref<16x4x5xf32, #tpu.memory_space<vmem>>, vector<1x1x5xf32>
    %49 = vector.shape_cast %48 : vector<1x1x5xf32> to vector<1x5xf32>
    %c6_68 = arith.constant 6 : index
    %c1_69 = arith.constant 1 : index
    %c0_70 = arith.constant 0 : index
    %50 = vector.load %arg3[%c6_68, %c1_69, %c0_70] : memref<16x4x5xf32, #tpu.memory_space<vmem>>, vector<1x1x5xf32>
    %51 = vector.shape_cast %50 : vector<1x1x5xf32> to vector<1x5xf32>
    %c6_71 = arith.constant 6 : index
    %c2_72 = arith.constant 2 : index
    %c0_73 = arith.constant 0 : index
    %52 = vector.load %arg3[%c6_71, %c2_72, %c0_73] : memref<16x4x5xf32, #tpu.memory_space<vmem>>, vector<1x1x5xf32>
    %53 = vector.shape_cast %52 : vector<1x1x5xf32> to vector<1x5xf32>
    %c6_74 = arith.constant 6 : index
    %c3_75 = arith.constant 3 : index
    %c0_76 = arith.constant 0 : index
    %54 = vector.load %arg3[%c6_74, %c3_75, %c0_76] : memref<16x4x5xf32, #tpu.memory_space<vmem>>, vector<1x1x5xf32>
    %55 = vector.shape_cast %54 : vector<1x1x5xf32> to vector<1x5xf32>
    %c7 = arith.constant 7 : index
    %c0_77 = arith.constant 0 : index
    %c0_78 = arith.constant 0 : index
    %56 = vector.load %arg3[%c7, %c0_77, %c0_78] : memref<16x4x5xf32, #tpu.memory_space<vmem>>, vector<1x1x5xf32>
    %57 = vector.shape_cast %56 : vector<1x1x5xf32> to vector<1x5xf32>
    %c7_79 = arith.constant 7 : index
    %c1_80 = arith.constant 1 : index
    %c0_81 = arith.constant 0 : index
    %58 = vector.load %arg3[%c7_79, %c1_80, %c0_81] : memref<16x4x5xf32, #tpu.memory_space<vmem>>, vector<1x1x5xf32>
    %59 = vector.shape_cast %58 : vector<1x1x5xf32> to vector<1x5xf32>
    %c7_82 = arith.constant 7 : index
    %c2_83 = arith.constant 2 : index
    %c0_84 = arith.constant 0 : index
    %60 = vector.load %arg3[%c7_82, %c2_83, %c0_84] : memref<16x4x5xf32, #tpu.memory_space<vmem>>, vector<1x1x5xf32>
    %61 = vector.shape_cast %60 : vector<1x1x5xf32> to vector<1x5xf32>
    %c7_85 = arith.constant 7 : index
    %c3_86 = arith.constant 3 : index
    %c0_87 = arith.constant 0 : index
    %62 = vector.load %arg3[%c7_85, %c3_86, %c0_87] : memref<16x4x5xf32, #tpu.memory_space<vmem>>, vector<1x1x5xf32>
    %63 = vector.shape_cast %62 : vector<1x1x5xf32> to vector<1x5xf32>
    %c8 = arith.constant 8 : index
    %c0_88 = arith.constant 0 : index
    %c0_89 = arith.constant 0 : index
    %64 = vector.load %arg3[%c8, %c0_88, %c0_89] : memref<16x4x5xf32, #tpu.memory_space<vmem>>, vector<1x1x5xf32>
    %65 = vector.shape_cast %64 : vector<1x1x5xf32> to vector<1x5xf32>
    %c8_90 = arith.constant 8 : index
    %c1_91 = arith.constant 1 : index
    %c0_92 = arith.constant 0 : index
    %66 = vector.load %arg3[%c8_90, %c1_91, %c0_92] : memref<16x4x5xf32, #tpu.memory_space<vmem>>, vector<1x1x5xf32>
    %67 = vector.shape_cast %66 : vector<1x1x5xf32> to vector<1x5xf32>
    %c8_93 = arith.constant 8 : index
    %c2_94 = arith.constant 2 : index
    %c0_95 = arith.constant 0 : index
    %68 = vector.load %arg3[%c8_93, %c2_94, %c0_95] : memref<16x4x5xf32, #tpu.memory_space<vmem>>, vector<1x1x5xf32>
    %69 = vector.shape_cast %68 : vector<1x1x5xf32> to vector<1x5xf32>
    %c8_96 = arith.constant 8 : index
    %c3_97 = arith.constant 3 : index
    %c0_98 = arith.constant 0 : index
    %70 = vector.load %arg3[%c8_96, %c3_97, %c0_98] : memref<16x4x5xf32, #tpu.memory_space<vmem>>, vector<1x1x5xf32>
    %71 = vector.shape_cast %70 : vector<1x1x5xf32> to vector<1x5xf32>
    %c9 = arith.constant 9 : index
    %c0_99 = arith.constant 0 : index
    %c0_100 = arith.constant 0 : index
    %72 = vector.load %arg3[%c9, %c0_99, %c0_100] : memref<16x4x5xf32, #tpu.memory_space<vmem>>, vector<1x1x5xf32>
    %73 = vector.shape_cast %72 : vector<1x1x5xf32> to vector<1x5xf32>
    %c9_101 = arith.constant 9 : index
    %c1_102 = arith.constant 1 : index
    %c0_103 = arith.constant 0 : index
    %74 = vector.load %arg3[%c9_101, %c1_102, %c0_103] : memref<16x4x5xf32, #tpu.memory_space<vmem>>, vector<1x1x5xf32>
    %75 = vector.shape_cast %74 : vector<1x1x5xf32> to vector<1x5xf32>
    %c9_104 = arith.constant 9 : index
    %c2_105 = arith.constant 2 : index
    %c0_106 = arith.constant 0 : index
    %76 = vector.load %arg3[%c9_104, %c2_105, %c0_106] : memref<16x4x5xf32, #tpu.memory_space<vmem>>, vector<1x1x5xf32>
    %77 = vector.shape_cast %76 : vector<1x1x5xf32> to vector<1x5xf32>
    %c9_107 = arith.constant 9 : index
    %c3_108 = arith.constant 3 : index
    %c0_109 = arith.constant 0 : index
    %78 = vector.load %arg3[%c9_107, %c3_108, %c0_109] : memref<16x4x5xf32, #tpu.memory_space<vmem>>, vector<1x1x5xf32>
    %79 = vector.shape_cast %78 : vector<1x1x5xf32> to vector<1x5xf32>
    %c10 = arith.constant 10 : index
    %c0_110 = arith.constant 0 : index
    %c0_111 = arith.constant 0 : index
    %80 = vector.load %arg3[%c10, %c0_110, %c0_111] : memref<16x4x5xf32, #tpu.memory_space<vmem>>, vector<1x1x5xf32>
    %81 = vector.shape_cast %80 : vector<1x1x5xf32> to vector<1x5xf32>
    %c10_112 = arith.constant 10 : index
    %c1_113 = arith.constant 1 : index
    %c0_114 = arith.constant 0 : index
    %82 = vector.load %arg3[%c10_112, %c1_113, %c0_114] : memref<16x4x5xf32, #tpu.memory_space<vmem>>, vector<1x1x5xf32>
    %83 = vector.shape_cast %82 : vector<1x1x5xf32> to vector<1x5xf32>
    %c10_115 = arith.constant 10 : index
    %c2_116 = arith.constant 2 : index
    %c0_117 = arith.constant 0 : index
    %84 = vector.load %arg3[%c10_115, %c2_116, %c0_117] : memref<16x4x5xf32, #tpu.memory_space<vmem>>, vector<1x1x5xf32>
    %85 = vector.shape_cast %84 : vector<1x1x5xf32> to vector<1x5xf32>
    %c10_118 = arith.constant 10 : index
    %c3_119 = arith.constant 3 : index
    %c0_120 = arith.constant 0 : index
    %86 = vector.load %arg3[%c10_118, %c3_119, %c0_120] : memref<16x4x5xf32, #tpu.memory_space<vmem>>, vector<1x1x5xf32>
    %87 = vector.shape_cast %86 : vector<1x1x5xf32> to vector<1x5xf32>
    %c11 = arith.constant 11 : index
    %c0_121 = arith.constant 0 : index
    %c0_122 = arith.constant 0 : index
    %88 = vector.load %arg3[%c11, %c0_121, %c0_122] : memref<16x4x5xf32, #tpu.memory_space<vmem>>, vector<1x1x5xf32>
    %89 = vector.shape_cast %88 : vector<1x1x5xf32> to vector<1x5xf32>
    %c11_123 = arith.constant 11 : index
    %c1_124 = arith.constant 1 : index
    %c0_125 = arith.constant 0 : index
    %90 = vector.load %arg3[%c11_123, %c1_124, %c0_125] : memref<16x4x5xf32, #tpu.memory_space<vmem>>, vector<1x1x5xf32>
    %91 = vector.shape_cast %90 : vector<1x1x5xf32> to vector<1x5xf32>
    %c11_126 = arith.constant 11 : index
    %c2_127 = arith.constant 2 : index
    %c0_128 = arith.constant 0 : index
    %92 = vector.load %arg3[%c11_126, %c2_127, %c0_128] : memref<16x4x5xf32, #tpu.memory_space<vmem>>, vector<1x1x5xf32>
    %93 = vector.shape_cast %92 : vector<1x1x5xf32> to vector<1x5xf32>
    %c11_129 = arith.constant 11 : index
    %c3_130 = arith.constant 3 : index
    %c0_131 = arith.constant 0 : index
    %94 = vector.load %arg3[%c11_129, %c3_130, %c0_131] : memref<16x4x5xf32, #tpu.memory_space<vmem>>, vector<1x1x5xf32>
    %95 = vector.shape_cast %94 : vector<1x1x5xf32> to vector<1x5xf32>
    %c12 = arith.constant 12 : index
    %c0_132 = arith.constant 0 : index
    %c0_133 = arith.constant 0 : index
    %96 = vector.load %arg3[%c12, %c0_132, %c0_133] : memref<16x4x5xf32, #tpu.memory_space<vmem>>, vector<1x1x5xf32>
    %97 = vector.shape_cast %96 : vector<1x1x5xf32> to vector<1x5xf32>
    %c12_134 = arith.constant 12 : index
    %c1_135 = arith.constant 1 : index
    %c0_136 = arith.constant 0 : index
    %98 = vector.load %arg3[%c12_134, %c1_135, %c0_136] : memref<16x4x5xf32, #tpu.memory_space<vmem>>, vector<1x1x5xf32>
    %99 = vector.shape_cast %98 : vector<1x1x5xf32> to vector<1x5xf32>
    %c12_137 = arith.constant 12 : index
    %c2_138 = arith.constant 2 : index
    %c0_139 = arith.constant 0 : index
    %100 = vector.load %arg3[%c12_137, %c2_138, %c0_139] : memref<16x4x5xf32, #tpu.memory_space<vmem>>, vector<1x1x5xf32>
    %101 = vector.shape_cast %100 : vector<1x1x5xf32> to vector<1x5xf32>
    %c12_140 = arith.constant 12 : index
    %c3_141 = arith.constant 3 : index
    %c0_142 = arith.constant 0 : index
    %102 = vector.load %arg3[%c12_140, %c3_141, %c0_142] : memref<16x4x5xf32, #tpu.memory_space<vmem>>, vector<1x1x5xf32>
    %103 = vector.shape_cast %102 : vector<1x1x5xf32> to vector<1x5xf32>
    %c13 = arith.constant 13 : index
    %c0_143 = arith.constant 0 : index
    %c0_144 = arith.constant 0 : index
    %104 = vector.load %arg3[%c13, %c0_143, %c0_144] : memref<16x4x5xf32, #tpu.memory_space<vmem>>, vector<1x1x5xf32>
    %105 = vector.shape_cast %104 : vector<1x1x5xf32> to vector<1x5xf32>
    %c13_145 = arith.constant 13 : index
    %c1_146 = arith.constant 1 : index
    %c0_147 = arith.constant 0 : index
    %106 = vector.load %arg3[%c13_145, %c1_146, %c0_147] : memref<16x4x5xf32, #tpu.memory_space<vmem>>, vector<1x1x5xf32>
    %107 = vector.shape_cast %106 : vector<1x1x5xf32> to vector<1x5xf32>
    %c13_148 = arith.constant 13 : index
    %c2_149 = arith.constant 2 : index
    %c0_150 = arith.constant 0 : index
    %108 = vector.load %arg3[%c13_148, %c2_149, %c0_150] : memref<16x4x5xf32, #tpu.memory_space<vmem>>, vector<1x1x5xf32>
    %109 = vector.shape_cast %108 : vector<1x1x5xf32> to vector<1x5xf32>
    %c13_151 = arith.constant 13 : index
    %c3_152 = arith.constant 3 : index
    %c0_153 = arith.constant 0 : index
    %110 = vector.load %arg3[%c13_151, %c3_152, %c0_153] : memref<16x4x5xf32, #tpu.memory_space<vmem>>, vector<1x1x5xf32>
    %111 = vector.shape_cast %110 : vector<1x1x5xf32> to vector<1x5xf32>
    %c14 = arith.constant 14 : index
    %c0_154 = arith.constant 0 : index
    %c0_155 = arith.constant 0 : index
    %112 = vector.load %arg3[%c14, %c0_154, %c0_155] : memref<16x4x5xf32, #tpu.memory_space<vmem>>, vector<1x1x5xf32>
    %113 = vector.shape_cast %112 : vector<1x1x5xf32> to vector<1x5xf32>
    %c14_156 = arith.constant 14 : index
    %c1_157 = arith.constant 1 : index
    %c0_158 = arith.constant 0 : index
    %114 = vector.load %arg3[%c14_156, %c1_157, %c0_158] : memref<16x4x5xf32, #tpu.memory_space<vmem>>, vector<1x1x5xf32>
    %115 = vector.shape_cast %114 : vector<1x1x5xf32> to vector<1x5xf32>
    %c14_159 = arith.constant 14 : index
    %c2_160 = arith.constant 2 : index
    %c0_161 = arith.constant 0 : index
    %116 = vector.load %arg3[%c14_159, %c2_160, %c0_161] : memref<16x4x5xf32, #tpu.memory_space<vmem>>, vector<1x1x5xf32>
    %117 = vector.shape_cast %116 : vector<1x1x5xf32> to vector<1x5xf32>
    %c14_162 = arith.constant 14 : index
    %c3_163 = arith.constant 3 : index
    %c0_164 = arith.constant 0 : index
    %118 = vector.load %arg3[%c14_162, %c3_163, %c0_164] : memref<16x4x5xf32, #tpu.memory_space<vmem>>, vector<1x1x5xf32>
    %119 = vector.shape_cast %118 : vector<1x1x5xf32> to vector<1x5xf32>
    %c15 = arith.constant 15 : index
    %c0_165 = arith.constant 0 : index
    %c0_166 = arith.constant 0 : index
    %120 = vector.load %arg3[%c15, %c0_165, %c0_166] : memref<16x4x5xf32, #tpu.memory_space<vmem>>, vector<1x1x5xf32>
    %121 = vector.shape_cast %120 : vector<1x1x5xf32> to vector<1x5xf32>
    %c15_167 = arith.constant 15 : index
    %c1_168 = arith.constant 1 : index
    %c0_169 = arith.constant 0 : index
    %122 = vector.load %arg3[%c15_167, %c1_168, %c0_169] : memref<16x4x5xf32, #tpu.memory_space<vmem>>, vector<1x1x5xf32>
    %123 = vector.shape_cast %122 : vector<1x1x5xf32> to vector<1x5xf32>
    %c15_170 = arith.constant 15 : index
    %c2_171 = arith.constant 2 : index
    %c0_172 = arith.constant 0 : index
    %124 = vector.load %arg3[%c15_170, %c2_171, %c0_172] : memref<16x4x5xf32, #tpu.memory_space<vmem>>, vector<1x1x5xf32>
    %125 = vector.shape_cast %124 : vector<1x1x5xf32> to vector<1x5xf32>
    %c15_173 = arith.constant 15 : index
    %c3_174 = arith.constant 3 : index
    %c0_175 = arith.constant 0 : index
    %126 = vector.load %arg3[%c15_173, %c3_174, %c0_175] : memref<16x4x5xf32, #tpu.memory_space<vmem>>, vector<1x1x5xf32>
    %127 = vector.shape_cast %126 : vector<1x1x5xf32> to vector<1x5xf32>
    %c0_176 = arith.constant 0 : index
    %c0_177 = arith.constant 0 : index
    %128 = vector.load %arg4[%c0_176, %c0_177] : memref<4x5xf32, #tpu.memory_space<vmem>>, vector<1x5xf32>
    %c1_178 = arith.constant 1 : index
    %c0_179 = arith.constant 0 : index
    %129 = vector.load %arg4[%c1_178, %c0_179] : memref<4x5xf32, #tpu.memory_space<vmem>>, vector<1x5xf32>
    %c2_180 = arith.constant 2 : index
    %c0_181 = arith.constant 0 : index
    %130 = vector.load %arg4[%c2_180, %c0_181] : memref<4x5xf32, #tpu.memory_space<vmem>>, vector<1x5xf32>
    %c3_182 = arith.constant 3 : index
    %c0_183 = arith.constant 0 : index
    %131 = vector.load %arg4[%c3_182, %c0_183] : memref<4x5xf32, #tpu.memory_space<vmem>>, vector<1x5xf32>
    %c0_184 = arith.constant 0 : index
    %c0_185 = arith.constant 0 : index
    %c0_186 = arith.constant 0 : index
    %132 = vector.load %arg2[%c0_184, %c0_185, %c0_186] : memref<16x8x5xf32, #tpu.memory_space<vmem>>, vector<1x8x5xf32>
    %133 = vector.shape_cast %132 : vector<1x8x5xf32> to vector<8x5xf32>
    %134 = vector.broadcast %1 : vector<1x5xf32> to vector<8x5xf32>
    %135 = arith.mulf %133, %134 : vector<8x5xf32>
    %136 = vector.broadcast %128 : vector<1x5xf32> to vector<8x5xf32>
    %137 = arith.addf %135, %136 : vector<8x5xf32>
    %138 = vector.broadcast %3 : vector<1x5xf32> to vector<8x5xf32>
    %139 = arith.mulf %133, %138 : vector<8x5xf32>
    %140 = vector.broadcast %129 : vector<1x5xf32> to vector<8x5xf32>
    %141 = arith.addf %139, %140 : vector<8x5xf32>
    %142 = vector.broadcast %5 : vector<1x5xf32> to vector<8x5xf32>
    %143 = arith.mulf %133, %142 : vector<8x5xf32>
    %144 = vector.broadcast %130 : vector<1x5xf32> to vector<8x5xf32>
    %145 = arith.addf %143, %144 : vector<8x5xf32>
    %146 = vector.broadcast %7 : vector<1x5xf32> to vector<8x5xf32>
    %147 = arith.mulf %133, %146 : vector<8x5xf32>
    %148 = vector.broadcast %131 : vector<1x5xf32> to vector<8x5xf32>
    %149 = arith.addf %147, %148 : vector<8x5xf32>
    %c1_187 = arith.constant 1 : index
    %c0_188 = arith.constant 0 : index
    %c0_189 = arith.constant 0 : index
    %150 = vector.load %arg2[%c1_187, %c0_188, %c0_189] : memref<16x8x5xf32, #tpu.memory_space<vmem>>, vector<1x8x5xf32>
    %151 = vector.shape_cast %150 : vector<1x8x5xf32> to vector<8x5xf32>
    %152 = vector.broadcast %9 : vector<1x5xf32> to vector<8x5xf32>
    %153 = arith.mulf %151, %152 : vector<8x5xf32>
    %154 = arith.addf %137, %153 : vector<8x5xf32>
    %155 = vector.broadcast %11 : vector<1x5xf32> to vector<8x5xf32>
    %156 = arith.mulf %151, %155 : vector<8x5xf32>
    %157 = arith.addf %141, %156 : vector<8x5xf32>
    %158 = vector.broadcast %13 : vector<1x5xf32> to vector<8x5xf32>
    %159 = arith.mulf %151, %158 : vector<8x5xf32>
    %160 = arith.addf %145, %159 : vector<8x5xf32>
    %161 = vector.broadcast %15 : vector<1x5xf32> to vector<8x5xf32>
    %162 = arith.mulf %151, %161 : vector<8x5xf32>
    %163 = arith.addf %149, %162 : vector<8x5xf32>
    %c2_190 = arith.constant 2 : index
    %c0_191 = arith.constant 0 : index
    %c0_192 = arith.constant 0 : index
    %164 = vector.load %arg2[%c2_190, %c0_191, %c0_192] : memref<16x8x5xf32, #tpu.memory_space<vmem>>, vector<1x8x5xf32>
    %165 = vector.shape_cast %164 : vector<1x8x5xf32> to vector<8x5xf32>
    %166 = vector.broadcast %17 : vector<1x5xf32> to vector<8x5xf32>
    %167 = arith.mulf %165, %166 : vector<8x5xf32>
    %168 = arith.addf %154, %167 : vector<8x5xf32>
    %169 = vector.broadcast %19 : vector<1x5xf32> to vector<8x5xf32>
    %170 = arith.mulf %165, %169 : vector<8x5xf32>
    %171 = arith.addf %157, %170 : vector<8x5xf32>
    %172 = vector.broadcast %21 : vector<1x5xf32> to vector<8x5xf32>
    %173 = arith.mulf %165, %172 : vector<8x5xf32>
    %174 = arith.addf %160, %173 : vector<8x5xf32>
    %175 = vector.broadcast %23 : vector<1x5xf32> to vector<8x5xf32>
    %176 = arith.mulf %165, %175 : vector<8x5xf32>
    %177 = arith.addf %163, %176 : vector<8x5xf32>
    %c3_193 = arith.constant 3 : index
    %c0_194 = arith.constant 0 : index
    %c0_195 = arith.constant 0 : index
    %178 = vector.load %arg2[%c3_193, %c0_194, %c0_195] : memref<16x8x5xf32, #tpu.memory_space<vmem>>, vector<1x8x5xf32>
    %179 = vector.shape_cast %178 : vector<1x8x5xf32> to vector<8x5xf32>
    %180 = vector.broadcast %25 : vector<1x5xf32> to vector<8x5xf32>
    %181 = arith.mulf %179, %180 : vector<8x5xf32>
    %182 = arith.addf %168, %181 : vector<8x5xf32>
    %183 = vector.broadcast %27 : vector<1x5xf32> to vector<8x5xf32>
    %184 = arith.mulf %179, %183 : vector<8x5xf32>
    %185 = arith.addf %171, %184 : vector<8x5xf32>
    %186 = vector.broadcast %29 : vector<1x5xf32> to vector<8x5xf32>
    %187 = arith.mulf %179, %186 : vector<8x5xf32>
    %188 = arith.addf %174, %187 : vector<8x5xf32>
    %189 = vector.broadcast %31 : vector<1x5xf32> to vector<8x5xf32>
    %190 = arith.mulf %179, %189 : vector<8x5xf32>
    %191 = arith.addf %177, %190 : vector<8x5xf32>
    %c4_196 = arith.constant 4 : index
    %c0_197 = arith.constant 0 : index
    %c0_198 = arith.constant 0 : index
    %192 = vector.load %arg2[%c4_196, %c0_197, %c0_198] : memref<16x8x5xf32, #tpu.memory_space<vmem>>, vector<1x8x5xf32>
    %193 = vector.shape_cast %192 : vector<1x8x5xf32> to vector<8x5xf32>
    %194 = vector.broadcast %33 : vector<1x5xf32> to vector<8x5xf32>
    %195 = arith.mulf %193, %194 : vector<8x5xf32>
    %196 = arith.addf %182, %195 : vector<8x5xf32>
    %197 = vector.broadcast %35 : vector<1x5xf32> to vector<8x5xf32>
    %198 = arith.mulf %193, %197 : vector<8x5xf32>
    %199 = arith.addf %185, %198 : vector<8x5xf32>
    %200 = vector.broadcast %37 : vector<1x5xf32> to vector<8x5xf32>
    %201 = arith.mulf %193, %200 : vector<8x5xf32>
    %202 = arith.addf %188, %201 : vector<8x5xf32>
    %203 = vector.broadcast %39 : vector<1x5xf32> to vector<8x5xf32>
    %204 = arith.mulf %193, %203 : vector<8x5xf32>
    %205 = arith.addf %191, %204 : vector<8x5xf32>
    %c5_199 = arith.constant 5 : index
    %c0_200 = arith.constant 0 : index
    %c0_201 = arith.constant 0 : index
    %206 = vector.load %arg2[%c5_199, %c0_200, %c0_201] : memref<16x8x5xf32, #tpu.memory_space<vmem>>, vector<1x8x5xf32>
    %207 = vector.shape_cast %206 : vector<1x8x5xf32> to vector<8x5xf32>
    %208 = vector.broadcast %41 : vector<1x5xf32> to vector<8x5xf32>
    %209 = arith.mulf %207, %208 : vector<8x5xf32>
    %210 = arith.addf %196, %209 : vector<8x5xf32>
    %211 = vector.broadcast %43 : vector<1x5xf32> to vector<8x5xf32>
    %212 = arith.mulf %207, %211 : vector<8x5xf32>
    %213 = arith.addf %199, %212 : vector<8x5xf32>
    %214 = vector.broadcast %45 : vector<1x5xf32> to vector<8x5xf32>
    %215 = arith.mulf %207, %214 : vector<8x5xf32>
    %216 = arith.addf %202, %215 : vector<8x5xf32>
    %217 = vector.broadcast %47 : vector<1x5xf32> to vector<8x5xf32>
    %218 = arith.mulf %207, %217 : vector<8x5xf32>
    %219 = arith.addf %205, %218 : vector<8x5xf32>
    %c6_202 = arith.constant 6 : index
    %c0_203 = arith.constant 0 : index
    %c0_204 = arith.constant 0 : index
    %220 = vector.load %arg2[%c6_202, %c0_203, %c0_204] : memref<16x8x5xf32, #tpu.memory_space<vmem>>, vector<1x8x5xf32>
    %221 = vector.shape_cast %220 : vector<1x8x5xf32> to vector<8x5xf32>
    %222 = vector.broadcast %49 : vector<1x5xf32> to vector<8x5xf32>
    %223 = arith.mulf %221, %222 : vector<8x5xf32>
    %224 = arith.addf %210, %223 : vector<8x5xf32>
    %225 = vector.broadcast %51 : vector<1x5xf32> to vector<8x5xf32>
    %226 = arith.mulf %221, %225 : vector<8x5xf32>
    %227 = arith.addf %213, %226 : vector<8x5xf32>
    %228 = vector.broadcast %53 : vector<1x5xf32> to vector<8x5xf32>
    %229 = arith.mulf %221, %228 : vector<8x5xf32>
    %230 = arith.addf %216, %229 : vector<8x5xf32>
    %231 = vector.broadcast %55 : vector<1x5xf32> to vector<8x5xf32>
    %232 = arith.mulf %221, %231 : vector<8x5xf32>
    %233 = arith.addf %219, %232 : vector<8x5xf32>
    %c7_205 = arith.constant 7 : index
    %c0_206 = arith.constant 0 : index
    %c0_207 = arith.constant 0 : index
    %234 = vector.load %arg2[%c7_205, %c0_206, %c0_207] : memref<16x8x5xf32, #tpu.memory_space<vmem>>, vector<1x8x5xf32>
    %235 = vector.shape_cast %234 : vector<1x8x5xf32> to vector<8x5xf32>
    %236 = vector.broadcast %57 : vector<1x5xf32> to vector<8x5xf32>
    %237 = arith.mulf %235, %236 : vector<8x5xf32>
    %238 = arith.addf %224, %237 : vector<8x5xf32>
    %239 = vector.broadcast %59 : vector<1x5xf32> to vector<8x5xf32>
    %240 = arith.mulf %235, %239 : vector<8x5xf32>
    %241 = arith.addf %227, %240 : vector<8x5xf32>
    %242 = vector.broadcast %61 : vector<1x5xf32> to vector<8x5xf32>
    %243 = arith.mulf %235, %242 : vector<8x5xf32>
    %244 = arith.addf %230, %243 : vector<8x5xf32>
    %245 = vector.broadcast %63 : vector<1x5xf32> to vector<8x5xf32>
    %246 = arith.mulf %235, %245 : vector<8x5xf32>
    %247 = arith.addf %233, %246 : vector<8x5xf32>
    %c8_208 = arith.constant 8 : index
    %c0_209 = arith.constant 0 : index
    %c0_210 = arith.constant 0 : index
    %248 = vector.load %arg2[%c8_208, %c0_209, %c0_210] : memref<16x8x5xf32, #tpu.memory_space<vmem>>, vector<1x8x5xf32>
    %249 = vector.shape_cast %248 : vector<1x8x5xf32> to vector<8x5xf32>
    %250 = vector.broadcast %65 : vector<1x5xf32> to vector<8x5xf32>
    %251 = arith.mulf %249, %250 : vector<8x5xf32>
    %252 = arith.addf %238, %251 : vector<8x5xf32>
    %253 = vector.broadcast %67 : vector<1x5xf32> to vector<8x5xf32>
    %254 = arith.mulf %249, %253 : vector<8x5xf32>
    %255 = arith.addf %241, %254 : vector<8x5xf32>
    %256 = vector.broadcast %69 : vector<1x5xf32> to vector<8x5xf32>
    %257 = arith.mulf %249, %256 : vector<8x5xf32>
    %258 = arith.addf %244, %257 : vector<8x5xf32>
    %259 = vector.broadcast %71 : vector<1x5xf32> to vector<8x5xf32>
    %260 = arith.mulf %249, %259 : vector<8x5xf32>
    %261 = arith.addf %247, %260 : vector<8x5xf32>
    %c9_211 = arith.constant 9 : index
    %c0_212 = arith.constant 0 : index
    %c0_213 = arith.constant 0 : index
    %262 = vector.load %arg2[%c9_211, %c0_212, %c0_213] : memref<16x8x5xf32, #tpu.memory_space<vmem>>, vector<1x8x5xf32>
    %263 = vector.shape_cast %262 : vector<1x8x5xf32> to vector<8x5xf32>
    %264 = vector.broadcast %73 : vector<1x5xf32> to vector<8x5xf32>
    %265 = arith.mulf %263, %264 : vector<8x5xf32>
    %266 = arith.addf %252, %265 : vector<8x5xf32>
    %267 = vector.broadcast %75 : vector<1x5xf32> to vector<8x5xf32>
    %268 = arith.mulf %263, %267 : vector<8x5xf32>
    %269 = arith.addf %255, %268 : vector<8x5xf32>
    %270 = vector.broadcast %77 : vector<1x5xf32> to vector<8x5xf32>
    %271 = arith.mulf %263, %270 : vector<8x5xf32>
    %272 = arith.addf %258, %271 : vector<8x5xf32>
    %273 = vector.broadcast %79 : vector<1x5xf32> to vector<8x5xf32>
    %274 = arith.mulf %263, %273 : vector<8x5xf32>
    %275 = arith.addf %261, %274 : vector<8x5xf32>
    %c10_214 = arith.constant 10 : index
    %c0_215 = arith.constant 0 : index
    %c0_216 = arith.constant 0 : index
    %276 = vector.load %arg2[%c10_214, %c0_215, %c0_216] : memref<16x8x5xf32, #tpu.memory_space<vmem>>, vector<1x8x5xf32>
    %277 = vector.shape_cast %276 : vector<1x8x5xf32> to vector<8x5xf32>
    %278 = vector.broadcast %81 : vector<1x5xf32> to vector<8x5xf32>
    %279 = arith.mulf %277, %278 : vector<8x5xf32>
    %280 = arith.addf %266, %279 : vector<8x5xf32>
    %281 = vector.broadcast %83 : vector<1x5xf32> to vector<8x5xf32>
    %282 = arith.mulf %277, %281 : vector<8x5xf32>
    %283 = arith.addf %269, %282 : vector<8x5xf32>
    %284 = vector.broadcast %85 : vector<1x5xf32> to vector<8x5xf32>
    %285 = arith.mulf %277, %284 : vector<8x5xf32>
    %286 = arith.addf %272, %285 : vector<8x5xf32>
    %287 = vector.broadcast %87 : vector<1x5xf32> to vector<8x5xf32>
    %288 = arith.mulf %277, %287 : vector<8x5xf32>
    %289 = arith.addf %275, %288 : vector<8x5xf32>
    %c11_217 = arith.constant 11 : index
    %c0_218 = arith.constant 0 : index
    %c0_219 = arith.constant 0 : index
    %290 = vector.load %arg2[%c11_217, %c0_218, %c0_219] : memref<16x8x5xf32, #tpu.memory_space<vmem>>, vector<1x8x5xf32>
    %291 = vector.shape_cast %290 : vector<1x8x5xf32> to vector<8x5xf32>
    %292 = vector.broadcast %89 : vector<1x5xf32> to vector<8x5xf32>
    %293 = arith.mulf %291, %292 : vector<8x5xf32>
    %294 = arith.addf %280, %293 : vector<8x5xf32>
    %295 = vector.broadcast %91 : vector<1x5xf32> to vector<8x5xf32>
    %296 = arith.mulf %291, %295 : vector<8x5xf32>
    %297 = arith.addf %283, %296 : vector<8x5xf32>
    %298 = vector.broadcast %93 : vector<1x5xf32> to vector<8x5xf32>
    %299 = arith.mulf %291, %298 : vector<8x5xf32>
    %300 = arith.addf %286, %299 : vector<8x5xf32>
    %301 = vector.broadcast %95 : vector<1x5xf32> to vector<8x5xf32>
    %302 = arith.mulf %291, %301 : vector<8x5xf32>
    %303 = arith.addf %289, %302 : vector<8x5xf32>
    %c12_220 = arith.constant 12 : index
    %c0_221 = arith.constant 0 : index
    %c0_222 = arith.constant 0 : index
    %304 = vector.load %arg2[%c12_220, %c0_221, %c0_222] : memref<16x8x5xf32, #tpu.memory_space<vmem>>, vector<1x8x5xf32>
    %305 = vector.shape_cast %304 : vector<1x8x5xf32> to vector<8x5xf32>
    %306 = vector.broadcast %97 : vector<1x5xf32> to vector<8x5xf32>
    %307 = arith.mulf %305, %306 : vector<8x5xf32>
    %308 = arith.addf %294, %307 : vector<8x5xf32>
    %309 = vector.broadcast %99 : vector<1x5xf32> to vector<8x5xf32>
    %310 = arith.mulf %305, %309 : vector<8x5xf32>
    %311 = arith.addf %297, %310 : vector<8x5xf32>
    %312 = vector.broadcast %101 : vector<1x5xf32> to vector<8x5xf32>
    %313 = arith.mulf %305, %312 : vector<8x5xf32>
    %314 = arith.addf %300, %313 : vector<8x5xf32>
    %315 = vector.broadcast %103 : vector<1x5xf32> to vector<8x5xf32>
    %316 = arith.mulf %305, %315 : vector<8x5xf32>
    %317 = arith.addf %303, %316 : vector<8x5xf32>
    %c13_223 = arith.constant 13 : index
    %c0_224 = arith.constant 0 : index
    %c0_225 = arith.constant 0 : index
    %318 = vector.load %arg2[%c13_223, %c0_224, %c0_225] : memref<16x8x5xf32, #tpu.memory_space<vmem>>, vector<1x8x5xf32>
    %319 = vector.shape_cast %318 : vector<1x8x5xf32> to vector<8x5xf32>
    %320 = vector.broadcast %105 : vector<1x5xf32> to vector<8x5xf32>
    %321 = arith.mulf %319, %320 : vector<8x5xf32>
    %322 = arith.addf %308, %321 : vector<8x5xf32>
    %323 = vector.broadcast %107 : vector<1x5xf32> to vector<8x5xf32>
    %324 = arith.mulf %319, %323 : vector<8x5xf32>
    %325 = arith.addf %311, %324 : vector<8x5xf32>
    %326 = vector.broadcast %109 : vector<1x5xf32> to vector<8x5xf32>
    %327 = arith.mulf %319, %326 : vector<8x5xf32>
    %328 = arith.addf %314, %327 : vector<8x5xf32>
    %329 = vector.broadcast %111 : vector<1x5xf32> to vector<8x5xf32>
    %330 = arith.mulf %319, %329 : vector<8x5xf32>
    %331 = arith.addf %317, %330 : vector<8x5xf32>
    %c14_226 = arith.constant 14 : index
    %c0_227 = arith.constant 0 : index
    %c0_228 = arith.constant 0 : index
    %332 = vector.load %arg2[%c14_226, %c0_227, %c0_228] : memref<16x8x5xf32, #tpu.memory_space<vmem>>, vector<1x8x5xf32>
    %333 = vector.shape_cast %332 : vector<1x8x5xf32> to vector<8x5xf32>
    %334 = vector.broadcast %113 : vector<1x5xf32> to vector<8x5xf32>
    %335 = arith.mulf %333, %334 : vector<8x5xf32>
    %336 = arith.addf %322, %335 : vector<8x5xf32>
    %337 = vector.broadcast %115 : vector<1x5xf32> to vector<8x5xf32>
    %338 = arith.mulf %333, %337 : vector<8x5xf32>
    %339 = arith.addf %325, %338 : vector<8x5xf32>
    %340 = vector.broadcast %117 : vector<1x5xf32> to vector<8x5xf32>
    %341 = arith.mulf %333, %340 : vector<8x5xf32>
    %342 = arith.addf %328, %341 : vector<8x5xf32>
    %343 = vector.broadcast %119 : vector<1x5xf32> to vector<8x5xf32>
    %344 = arith.mulf %333, %343 : vector<8x5xf32>
    %345 = arith.addf %331, %344 : vector<8x5xf32>
    %c15_229 = arith.constant 15 : index
    %c0_230 = arith.constant 0 : index
    %c0_231 = arith.constant 0 : index
    %346 = vector.load %arg2[%c15_229, %c0_230, %c0_231] : memref<16x8x5xf32, #tpu.memory_space<vmem>>, vector<1x8x5xf32>
    %347 = vector.shape_cast %346 : vector<1x8x5xf32> to vector<8x5xf32>
    %348 = vector.broadcast %121 : vector<1x5xf32> to vector<8x5xf32>
    %349 = arith.mulf %347, %348 : vector<8x5xf32>
    %350 = arith.addf %336, %349 : vector<8x5xf32>
    %351 = vector.broadcast %123 : vector<1x5xf32> to vector<8x5xf32>
    %352 = arith.mulf %347, %351 : vector<8x5xf32>
    %353 = arith.addf %339, %352 : vector<8x5xf32>
    %354 = vector.broadcast %125 : vector<1x5xf32> to vector<8x5xf32>
    %355 = arith.mulf %347, %354 : vector<8x5xf32>
    %356 = arith.addf %342, %355 : vector<8x5xf32>
    %357 = vector.broadcast %127 : vector<1x5xf32> to vector<8x5xf32>
    %358 = arith.mulf %347, %357 : vector<8x5xf32>
    %359 = arith.addf %345, %358 : vector<8x5xf32>
    %c0_232 = arith.constant 0 : index
    %c0_233 = arith.constant 0 : index
    %c0_234 = arith.constant 0 : index
    %360 = vector.load %arg5[%c0_232, %c0_233, %c0_234] : memref<4x8x5xf32, #tpu.memory_space<vmem>>, vector<1x8x5xf32>
    %361 = vector.shape_cast %360 : vector<1x8x5xf32> to vector<8x5xf32>
    %362 = vector.shape_cast %350 : vector<8x5xf32> to vector<1x8x5xf32>
    tpu.vector_store %arg5[%c0_232, %c0_233, %c0_234], %362 {strides = array<i32>} : memref<4x8x5xf32, #tpu.memory_space<vmem>>, vector<1x8x5xf32>,
    %c1_235 = arith.constant 1 : index
    %c0_236 = arith.constant 0 : index
    %c0_237 = arith.constant 0 : index
    %363 = vector.load %arg5[%c1_235, %c0_236, %c0_237] : memref<4x8x5xf32, #tpu.memory_space<vmem>>, vector<1x8x5xf32>
    %364 = vector.shape_cast %363 : vector<1x8x5xf32> to vector<8x5xf32>
    %365 = vector.shape_cast %353 : vector<8x5xf32> to vector<1x8x5xf32>
    tpu.vector_store %arg5[%c1_235, %c0_236, %c0_237], %365 {strides = array<i32>} : memref<4x8x5xf32, #tpu.memory_space<vmem>>, vector<1x8x5xf32>,
    %c2_238 = arith.constant 2 : index
    %c0_239 = arith.constant 0 : index
    %c0_240 = arith.constant 0 : index
    %366 = vector.load %arg5[%c2_238, %c0_239, %c0_240] : memref<4x8x5xf32, #tpu.memory_space<vmem>>, vector<1x8x5xf32>
    %367 = vector.shape_cast %366 : vector<1x8x5xf32> to vector<8x5xf32>
    %368 = vector.shape_cast %356 : vector<8x5xf32> to vector<1x8x5xf32>
    tpu.vector_store %arg5[%c2_238, %c0_239, %c0_240], %368 {strides = array<i32>} : memref<4x8x5xf32, #tpu.memory_space<vmem>>, vector<1x8x5xf32>,
    %c3_241 = arith.constant 3 : index
    %c0_242 = arith.constant 0 : index
    %c0_243 = arith.constant 0 : index
    %369 = vector.load %arg5[%c3_241, %c0_242, %c0_243] : memref<4x8x5xf32, #tpu.memory_space<vmem>>, vector<1x8x5xf32>
    %370 = vector.shape_cast %369 : vector<1x8x5xf32> to vector<8x5xf32>
    %371 = vector.shape_cast %359 : vector<8x5xf32> to vector<1x8x5xf32>
    tpu.vector_store %arg5[%c3_241, %c0_242, %c0_243], %371 {strides = array<i32>} : memref<4x8x5xf32, #tpu.memory_space<vmem>>, vector<1x8x5xf32>,
    return
  }
  func.func @transform_0(%arg0: i32, %arg1: i32) -> (i32, i32, i32) {
    %c0_i32 = arith.constant 0 : i32
    %c0_i32_0 = arith.constant 0 : i32
    return %c0_i32, %arg1, %arg0 : i32, i32, i32
  }
  func.func @transform_1(%arg0: i32, %arg1: i32) -> (i32, i32, i32) {
    %c0_i32 = arith.constant 0 : i32
    %c0_i32_0 = arith.constant 0 : i32
    %c0_i32_1 = arith.constant 0 : i32
    return %c0_i32, %c0_i32_0, %arg0 : i32, i32, i32
  }
  func.func @transform_2(%arg0: i32, %arg1: i32) -> (i32, i32) {
    %c0_i32 = arith.constant 0 : i32
    %c0_i32_0 = arith.constant 0 : i32
    return %c0_i32, %arg0 : i32, i32
  }
  func.func @transform_3(%arg0: i32, %arg1: i32) -> (i32, i32, i32) {
    %c0_i32 = arith.constant 0 : i32
    %c0_i32_0 = arith.constant 0 : i32
    return %c0_i32, %arg1, %arg0 : i32, i32, i32
  }
}

</mosaic_0001>

<bundles_post_ra>
// kernel: tpu_custom_call.1
= control target key start
LH: loop header
LB: loop body
LE: loop exit
PB: predicated region body
PF: predicated region fallthrough
CT: control target
= control target key end

     0   :  { %vm528_vm0 = vcmask 39936   ;;  %s1070_s1 = inlined_call_operand.vmem [shape: f32[16,4,5], index: 1, kind: input, shape index: {}]   ;;  %s1071_s0 = inlined_call_operand.vmem [shape: f32[16,8,5], index: 0, kind: input, shape index: {}]   ;;  %s1072_s2 = inlined_call_operand.vmem [shape: f32[4,5], index: 2, kind: input, shape index: {}]   ;;  %s1073_s3 = inlined_call_operand.vmem [shape: f32[4,8,5], index: 3, kind: output, shape index: {}]  }
   0x1   :  { %v600_v0 = vld [vmem:[%s1070_s1] ss:$0 sm:$0xff]  ;;  %v609_v1 = vld [vmem:[%s1070_s1 + $0x4] ss:$0 sm:$0xff]  ;;  %v614_v2 = vld [vmem:[%s1070_s1 + $0x8] ss:$0 sm:$0xff] }
   0x2   :  { %v601_v3 = vld [vmem:[%s1072_s2] ss:$0 sm:$0xff]  ;;  %v727_v6 = vld [vmem:[%s1071_s0 + $0x8] sm:$0xff]  ;;  %v732_v7 = vld [vmem:[%s1071_s0 + $0x10] sm:$0xff] }
   0x3   :  { %v721_v4 = vld [vmem:[%s1071_s0] sm:$0xff]  ;;  %v619_v8 = vld [vmem:[%s1070_s1 + $0xc] ss:$0 sm:$0xff]  ;;  %v144_v9 = vmul.f32 %v609_v1, %v727_v6  ;;  %v741_v10 = vld [vmem:[%s1071_s0 + $0x18] sm:$0xff]  ;;  %v170_v12 = vmul.f32 %v614_v2, %v732_v7 }
   0x4   :  { %v102_v5 = vmul.f32 %v600_v0, %v721_v4  ;;  %v624_v13 = vld [vmem:[%s1070_s1 + $0x10] ss:$0 sm:$0xff]  ;;  %v750_v14 = vld [vmem:[%s1071_s0 + $0x20] sm:$0xff]  ;;  %v196_v16 = vmul.f32 %v619_v8, %v741_v10  ;;  %v629_v17 = vld [vmem:[%s1070_s1 + $0x14] ss:$0 sm:$0xff] }
   0x5   :  { %v759_v18 = vld [vmem:[%s1071_s0 + $0x28] sm:$0xff]  ;;  %v602_v19 = vld [vmem:[%s1070_s1 + $0x1] ss:$0 sm:$0xff]  ;;  %v222_v21 = vmul.f32 %v624_v13, %v750_v14  ;;  %v610_v22 = vld [vmem:[%s1070_s1 + $0x5] ss:$0 sm:$0xff] }
   0x6   :  { %v107_v11 = vadd.f32 %v601_v3, %v102_v5  ;;  %v634_v23 = vld [vmem:[%s1070_s1 + $0x18] ss:$0 sm:$0xff]  ;;  %v774_v24 = vld [vmem:[%s1071_s0 + $0x30] sm:$0xff]  ;;  %v112_v25 = vmul.f32 %v602_v19, %v721_v4  ;;  %v248_v27 = vmul.f32 %v629_v17, %v759_v18  ;;  %v615_v28 = vld [vmem:[%s1070_s1 + $0x9] ss:$0 sm:$0xff]  ;;  %v150_v31 = vmul.f32 %v610_v22, %v727_v6 }
   0x7   :  { %v639_v29 = vld [vmem:[%s1070_s1 + $0x1c] ss:$0 sm:$0xff]  ;;  %v274_v33 = vmul.f32 %v634_v23, %v774_v24  ;;  %v620_v34 = vld [vmem:[%s1070_s1 + $0xd] ss:$0 sm:$0xff]  ;;  %v603_v35 = vld [vmem:[%s1072_s2 + $0x1] ss:$0 sm:$0xff]  ;;  %v176_v40 = vmul.f32 %v615_v28, %v732_v7 }
   0x8   :  { %v145_v15 = vadd.f32 %v144_v9, %v107_v11  ;;  %v787_v30 = vld [vmem:[%s1071_s0 + $0x38] sm:$0xff]  ;;  %v604_v36 = vld [vmem:[%s1070_s1 + $0x2] ss:$0 sm:$0xff]  ;;  %v644_v37 = vld [vmem:[%s1070_s1 + $0x20] ss:$0 sm:$0xff]  ;;  %v117_v39 = vadd.f32 %v603_v35, %v112_v25  ;;  %v202_v48 = vmul.f32 %v620_v34, %v741_v10 }
   0x9   :  { %v806_v38 = vld [vmem:[%s1071_s0 + $0x40] sm:$0xff]  ;;  %v300_v42 = vmul.f32 %v639_v29, %v787_v30  ;;  %v625_v43 = vld [vmem:[%s1070_s1 + $0x11] ss:$0 sm:$0xff]  ;;  %v822_v46 = vld [vmem:[%s1071_s0 + $0x48] sm:$0xff]  ;;  %v122_v49 = vmul.f32 %v604_v36, %v721_v4 }
   0xa   :  { %v171_v20 = vadd.f32 %v170_v12, %v145_v15  ;;  %v611_v44 = vld [vmem:[%s1070_s1 + $0x6] ss:$0 sm:$0xff]  ;;  %v649_v45 = vld [vmem:[%s1070_s1 + $0x24] ss:$0 sm:$0xff]  ;;  %v151_v47 = vadd.f32 %v150_v31, %v117_v39  ;;  %v326_v51 = vmul.f32 %v644_v37, %v806_v38  ;;  %v630_v52 = vld [vmem:[%s1070_s1 + $0x15] ss:$0 sm:$0xff]  ;;  %v228_v58 = vmul.f32 %v625_v43, %v750_v14 }
   0xb   :  { %v616_v53 = vld [vmem:[%s1070_s1 + $0xa] ss:$0 sm:$0xff]  ;;  %v654_v54 = vld [vmem:[%s1070_s1 + $0x28] ss:$0 sm:$0xff]  ;;  %v839_v55 = vld [vmem:[%s1071_s0 + $0x50] sm:$0xff]  ;;  %v156_v59 = vmul.f32 %v611_v44, %v727_v6  ;;  %v352_v61 = vmul.f32 %v649_v45, %v822_v46  ;;  %v254_v5 = vmul.f32 %v630_v52, %v759_v18 }
   0xc   :  { %v197_v26 = vadd.f32 %v196_v16, %v171_v20  ;;  %v635_v56 = vld [vmem:[%s1070_s1 + $0x19] ss:$0 sm:$0xff]  ;;  %v177_v57 = vadd.f32 %v176_v40, %v151_v47  ;;  %v621_v62 = vld [vmem:[%s1070_s1 + $0xe] ss:$0 sm:$0xff]  ;;  %v605_v63 = vld [vmem:[%s1072_s2 + $0x2] ss:$0 sm:$0xff]  ;;  %v182_v9 = vmul.f32 %v616_v53, %v732_v7  ;;  %v378_v13 = vmul.f32 %v654_v54, %v839_v55 }
   0xd   :  { %v606_v0 = vld [vmem:[%s1070_s1 + $0x3] ss:$0 sm:$0xff]  ;;  %v659_v1 = vld [vmem:[%s1070_s1 + $0x2c] ss:$0 sm:$0xff]  ;;  %v862_v2 = vld [vmem:[%s1071_s0 + $0x58] sm:$0xff]  ;;  %v127_v8 = vadd.f32 %v605_v63, %v122_v49  ;;  %v280_v22 = vmul.f32 %v635_v56, %v774_v24  ;;  %v208_v25 = vmul.f32 %v621_v62, %v741_v10 }
   0xe   :  { %v223_v32 = vadd.f32 %v222_v21, %v197_v26  ;;  %v203_v3 = vadd.f32 %v202_v48, %v177_v57  ;;  %v612_v11 = vld [vmem:[%s1070_s1 + $0x7] ss:$0 sm:$0xff]  ;;  %v640_v15 = vld [vmem:[%s1070_s1 + $0x1d] ss:$0 sm:$0xff]  ;;  %v626_v16 = vld [vmem:[%s1070_s1 + $0x12] ss:$0 sm:$0xff]  ;;  %v132_v17 = vmul.f32 %v606_v0, %v721_v4  ;;  %v404_v28 = vmul.f32 %v659_v1, %v862_v2 }
   0xf   :  { %v664_v19 = vld [vmem:[%s1070_s1 + $0x30] ss:$0 sm:$0xff]  ;;  %v883_v20 = vld [vmem:[%s1071_s0 + $0x60] sm:$0xff]  ;;  %v157_v23 = vadd.f32 %v156_v59, %v127_v8  ;;  %v617_v26 = vld [vmem:[%s1070_s1 + $0xb] ss:$0 sm:$0xff]  ;;  %v306_v35 = vmul.f32 %v640_v15, %v787_v30  ;;  %v234_v37 = vmul.f32 %v626_v16, %v750_v14 }
  0x10   :  { %v249_v41 = vadd.f32 %v248_v27, %v223_v32  ;;  %v229_v21 = vadd.f32 %v228_v58, %v203_v3  ;;  %v669_v4 = vld [vmem:[%s1070_s1 + $0x34] ss:$0 sm:$0xff]  ;;  %v645_v29 = vld [vmem:[%s1070_s1 + $0x21] ss:$0 sm:$0xff]  ;;  %v631_v31 = vld [vmem:[%s1070_s1 + $0x16] ss:$0 sm:$0xff]  ;;  %v162_v32 = vmul.f32 %v612_v11, %v727_v6  ;;  %v188_v45 = vmul.f32 %v617_v26, %v732_v7 }
  0x11   :  { %v183_v36 = vadd.f32 %v182_v9, %v157_v23  ;;  %v622_v39 = vld [vmem:[%s1070_s1 + $0xf] ss:$0 sm:$0xff]  ;;  %v607_v40 = vld [vmem:[%s1072_s2 + $0x3] ss:$0 sm:$0xff]  ;;  %v636_v43 = vld [vmem:[%s1070_s1 + $0x1a] ss:$0 sm:$0xff]  ;;  %v260_v52 = vmul.f32 %v631_v31, %v759_v18 }
  0x12   :  { %v275_v50 = vadd.f32 %v274_v33, %v249_v41  ;;  %v904_v33 = vld [vmem:[%s1071_s0 + $0x68] sm:$0xff]  ;;  %v255_v34 = vadd.f32 %v254_v5, %v229_v21  ;;  %v430_v41 = vmul.f32 %v664_v19, %v883_v20  ;;  %v137_v44 = vadd.f32 %v607_v40, %v132_v17  ;;  %v674_v47 = vld [vmem:[%s1070_s1 + $0x38] ss:$0 sm:$0xff]  ;;  %v928_v48 = vld [vmem:[%s1071_s0 + $0x70] sm:$0xff] }
  0x13   :  { %v627_v53 = vld [vmem:[%s1070_s1 + $0x13] ss:$0 sm:$0xff]  ;;  %v456_v54 = vmul.f32 %v669_v4, %v904_v33  ;;  %v655_v56 = vld [vmem:[%s1070_s1 + $0x29] ss:$0 sm:$0xff]  ;;  %v641_v57 = vld [vmem:[%s1070_s1 + $0x1e] ss:$0 sm:$0xff]  ;;  %v214_v59 = vmul.f32 %v622_v39, %v741_v10  ;;  %v286_v1 = vmul.f32 %v636_v43, %v774_v24  ;;  %v482_v5 = vmul.f32 %v674_v47, %v928_v48 }
  0x14   :  { %v301_v60 = vadd.f32 %v300_v42, %v275_v50  ;;  %v650_v42 = vld [vmem:[%s1070_s1 + $0x25] ss:$0 sm:$0xff]  ;;  %v281_v49 = vadd.f32 %v280_v22, %v255_v34  ;;  %v332_v50 = vmul.f32 %v645_v29, %v806_v38  ;;  %v163_v58 = vadd.f32 %v162_v32, %v137_v44  ;;  %v632_v3 = vld [vmem:[%s1070_s1 + $0x17] ss:$0 sm:$0xff]  ;;  %v660_v8 = vld [vmem:[%s1070_s1 + $0x2d] ss:$0 sm:$0xff] }
  0x15   :  { %v358_v63 = vmul.f32 %v650_v42, %v822_v46  ;;  %v646_v9 = vld [vmem:[%s1070_s1 + $0x22] ss:$0 sm:$0xff]  ;;  %v384_v15 = vmul.f32 %v655_v56, %v839_v55  ;;  %v312_v17 = vmul.f32 %v641_v57, %v787_v30  ;;  %v637_v19 = vld [vmem:[%s1070_s1 + $0x1b] ss:$0 sm:$0xff]  ;;  %v665_v23 = vld [vmem:[%s1070_s1 + $0x31] ss:$0 sm:$0xff]  ;;  %v266_v26 = vmul.f32 %v632_v3, %v759_v18 }
  0x16   :  { %v327_v12 = vadd.f32 %v326_v51, %v301_v60  ;;  %v209_v51 = vadd.f32 %v208_v25, %v183_v36  ;;  %v679_v60 = vld [vmem:[%s1070_s1 + $0x3c] ss:$0 sm:$0xff]  ;;  %v307_v62 = vadd.f32 %v306_v35, %v281_v49  ;;  %v189_v11 = vadd.f32 %v188_v45, %v163_v58  ;;  %v642_v31 = vld [vmem:[%s1070_s1 + $0x1f] ss:$0 sm:$0xff]  ;;  %v670_v34 = vld [vmem:[%s1070_s1 + $0x35] ss:$0 sm:$0xff] }
  0x17   :  { %v338_v29 = vmul.f32 %v646_v9, %v806_v38  ;;  %v656_v18 = vld [vmem:[%s1070_s1 + $0x2a] ss:$0 sm:$0xff]  ;;  %v292_v36 = vmul.f32 %v637_v19, %v774_v24  ;;  %v436_v39 = vmul.f32 %v665_v23, %v883_v20  ;;  %v675_v43 = vld [vmem:[%s1070_s1 + $0x39] ss:$0 sm:$0xff]  ;;  %v661_v44 = vld [vmem:[%s1070_s1 + $0x2e] ss:$0 sm:$0xff]  ;;  %v318_v45 = vmul.f32 %v642_v31, %v787_v30 }
  0x18   :  { %v353_v27 = vadd.f32 %v352_v61, %v327_v12  ;;  %v949_v61 = vld [vmem:[%s1071_s0 + $0x78] sm:$0xff]  ;;  %v235_v0 = vadd.f32 %v234_v37, %v209_v51  ;;  %v240_v12 = vmul.f32 %v627_v53, %v750_v14  ;;  %v651_v14 = vld [vmem:[%s1070_s1 + $0x26] ss:$0 sm:$0xff]  ;;  %v215_v25 = vadd.f32 %v214_v59, %v189_v11  ;;  %v666_v30 = vld [vmem:[%s1070_s1 + $0x32] ss:$0 sm:$0xff] }
  0x19   :  { %v508_v22 = vmul.f32 %v679_v60, %v949_v61  ;;  %v462_v49 = vmul.f32 %v670_v34, %v904_v33  ;;  %v390_v51 = vmul.f32 %v656_v18, %v839_v55  ;;  %v680_v53 = vld [vmem:[%s1070_s1 + $0x3d] ss:$0 sm:$0xff]  ;;  %v488_v57 = vmul.f32 %v675_v43, %v928_v48  ;;  %v657_v60 = vld [vmem:[%s1070_s1 + $0x2b] ss:$0 sm:$0xff] }
  0x1a   :  { %v379_v6 = vadd.f32 %v378_v13, %v353_v27  ;;  %v333_v13 = vadd.f32 %v332_v50, %v307_v62  ;;  %v261_v16 = vadd.f32 %v260_v52, %v235_v0  ;;  %v410_v27 = vmul.f32 %v660_v8, %v862_v2  ;;  %v652_v52 = vld [vmem:[%s1070_s1 + $0x27] ss:$0 sm:$0xff]  ;;  %v671_v62 = vld [vmem:[%s1070_s1 + $0x36] ss:$0 sm:$0xff]  ;;  %v676_v8 = vld [vmem:[%s1070_s1 + $0x3a] ss:$0 sm:$0xff] }
  0x1b   :  { %v241_v35 = vadd.f32 %v240_v12, %v215_v25  ;;  %v416_v59 = vmul.f32 %v661_v44, %v862_v2  ;;  %v370_v0 = vmul.f32 %v652_v52, %v822_v46  ;;  %v396_v11 = vmul.f32 %v657_v60, %v839_v55  ;;  %v672_v55 = vld [vmem:[%s1070_s1 + $0x37] ss:$0 sm:$0xff] }
  0x1c   :  { %v405_v7 = vadd.f32 %v404_v28, %v379_v6  ;;  %v359_v4 = vadd.f32 %v358_v63, %v333_v13  ;;  %v287_v28 = vadd.f32 %v286_v1, %v261_v16  ;;  %v364_v6 = vmul.f32 %v651_v14, %v822_v46  ;;  %v681_v16 = vld [vmem:[%s1070_s1 + $0x3e] ss:$0 sm:$0xff] }
  0x1d   :  { %v267_v24 = vadd.f32 %v266_v26, %v241_v35  ;;  %v468_v46 = vmul.f32 %v671_v62, %v904_v33  ;;  %v494_v23 = vmul.f32 %v676_v8, %v928_v48 }
  0x1e   :  { %v431_v10 = vadd.f32 %v430_v41, %v405_v7  ;;  %v385_v37 = vadd.f32 %v384_v15, %v359_v4  ;;  %v313_v40 = vadd.f32 %v312_v17, %v287_v28  ;;  %v647_v41 = vld [vmem:[%s1070_s1 + $0x23] ss:$0 sm:$0xff]  ;;  %v667_v15 = vld [vmem:[%s1070_s1 + $0x33] ss:$0 sm:$0xff]  ;;  %v520_v4 = vmul.f32 %v681_v16, %v949_v61 }
  0x1f   :  { %v293_v7 = vadd.f32 %v292_v36, %v267_v24  ;;  %v448_v25 = vmul.f32 %v667_v15, %v883_v20  ;;  %v474_v28 = vmul.f32 %v672_v55, %v904_v33 }
  0x20   :  { %v457_v21 = vadd.f32 %v456_v54, %v431_v10  ;;  %v411_v47 = vadd.f32 %v410_v27, %v385_v37  ;;  %v339_v50 = vadd.f32 %v338_v29, %v313_v40  ;;  %v344_v54 = vmul.f32 %v647_v41, %v806_v38 }
  0x21   :  { %v319_v63 = vadd.f32 %v318_v45, %v293_v7  ;;  %v514_v38 = vmul.f32 %v680_v53, %v949_v61  ;;  %v442_v10 = vmul.f32 %v666_v30, %v883_v20  ;;  %v682_v20 = vld [vmem:[%s1070_s1 + $0x3f] ss:$0 sm:$0xff] }
  0x22   :  { %v483_v32 = vadd.f32 %v482_v5, %v457_v21  ;;  %v437_v56 = vadd.f32 %v436_v39, %v411_v47  ;;  %v365_v58 = vadd.f32 %v364_v6, %v339_v50  ;;  %v662_v5 = vld [vmem:[%s1070_s1 + $0x2f] ss:$0 sm:$0xff]  ;;  %v526_v35 = vmul.f32 %v682_v20, %v949_v61 }
  0x23   :  { %v345_v9 = vadd.f32 %v344_v54, %v319_v63  ;;  %v422_v19 = vmul.f32 %v662_v5, %v862_v2  ;;  %v677_v2 = vld [vmem:[%s1070_s1 + $0x3b] ss:$0 sm:$0xff] }
  0x24   :  { %v509_v42 = vadd.f32 %v508_v22, %v483_v32  ;;  %v463_v1 = vadd.f32 %v462_v49, %v437_v56  ;;  %v391_v3 = vadd.f32 %v390_v51, %v365_v58  ;;  %v500_v32 = vmul.f32 %v677_v2, %v928_v48 }
  0x25   :  { %v371_v17 = vadd.f32 %v370_v0, %v345_v9 }
  0x26   :  { %529 = vst.msk [vmem:[%s1073_s3] sm:$0xff] %vm528_vm0, %v509_v42  ;;  %v489_v12 = vadd.f32 %v488_v57, %v463_v1  ;;  %v417_v13 = vadd.f32 %v416_v59, %v391_v3 }
  0x27   :  { %v397_v14 = vadd.f32 %v396_v11, %v371_v17 }
  0x28   :  { %v515_v21 = vadd.f32 %v514_v38, %v489_v12  ;;  %v443_v22 = vadd.f32 %v442_v10, %v417_v13 }
  0x29   :  { %v423_v27 = vadd.f32 %v422_v19, %v397_v14 }
  0x2a   :  { %683 = vst.msk [vmem:[%s1073_s3 + $0x8] sm:$0xff] %vm528_vm0, %v515_v21  ;;  %v469_v26 = vadd.f32 %v468_v46, %v443_v22 }
  0x2b   :  { %v449_v31 = vadd.f32 %v448_v25, %v423_v27 }
  0x2c   :  { %v495_v29 = vadd.f32 %v494_v23, %v469_v26 }
  0x2d   :  { %v475_v18 = vadd.f32 %v474_v28, %v449_v31 }
  0x2e   :  { %v521_v34 = vadd.f32 %v520_v4, %v495_v29 }
  0x2f   :  { %v501_v36 = vadd.f32 %v500_v32, %v475_v18 }
  0x30   :  { %684 = vst.msk [vmem:[%s1073_s3 + $0x10] sm:$0xff] %vm528_vm0, %v521_v34 }
  0x31   :  { %v527_v37 = vadd.f32 %v526_v35, %v501_v36 }
  0x33   :  { %685 = vst.msk [vmem:[%s1073_s3 + $0x18] sm:$0xff] %vm528_vm0, %v527_v37 }

</bundles_post_ra>
